<compile_context>
chip_gen: v7x
topology: tpu7x:2x2x1
jax: 0.10.0
libtpu: 0.0.40
codegen_flags: <defaults>
</compile_context>

<pallas_src>
import functools

import numpy as np
import jax
import jax.numpy as jnp
from jax.experimental import pallas as pl
from jax.experimental.pallas import tpu as pltpu

LANES = 128  # vreg lane width


def _sublanes_for(dtype):
    # Sub-32-bit dtypes pack along sublanes: f32 -> 8, bf16/f16 -> 16, int8/fp8 -> 32.
    return {4: 8, 2: 16, 1: 32}[jnp.dtype(dtype).itemsize]


def _round_up(n, m):
    return ((n + m - 1) // m) * m


def _mul_kernel_const(x_ref, o_ref, *, weight):
    # weight is a compile-time Python scalar, folded into the VPU multiply.
    o_ref[...] = x_ref[...] * weight


def _mul_kernel_dyn(w_ref, x_ref, o_ref):
    # w_ref: (1, 1) scalar weight in SMEM (scalar path, broadcast on the VPU).
    o_ref[...] = x_ref[...] * w_ref[0, 0]


def mul_forward(x, weight, *, max_block_bytes=4 << 20):
    """Pallas implementation of Mul.forward: y = x * weight (scalar weight)."""
    orig_shape = x.shape
    total = x.size
    if total == 0:
        return x * weight

    dtype = x.dtype
    itemsize = jnp.dtype(dtype).itemsize
    sublanes = _sublanes_for(dtype)

    # Lane-dense view: flatten to (rows, 128). Contiguous reshape -> free.
    pad = (-total) % LANES
    x_flat = x.reshape(-1)
    if pad:
        # Rare ragged case (NN shapes / the test are multiples of 128): pad <= 127 elems.
        x_flat = jnp.pad(x_flat, (0, pad))
    rows = (total + pad) // LANES
    x2d = x_flat.reshape(rows, LANES)

    # Block sizing: ~4 MiB blocks. Compute nblocks first so padding/masking
    # waste is bounded by (sublanes-1) rows per grid, not block_rows-1.
    max_block_rows = max(sublanes, max_block_bytes // (LANES * itemsize))
    if rows <= max_block_rows:
        block_rows = rows            # single full-extent block (always legal)
        nblocks = 1
    else:
        nblocks = pl.cdiv(rows, max_block_rows)
        block_rows = _round_up(pl.cdiv(rows, nblocks), sublanes)
        nblocks = pl.cdiv(rows, block_rows)
    # Partial last block is handled by Pallas edge-block masking: no row padding.

    x_spec = pl.BlockSpec((block_rows, LANES), lambda i: (i, 0))
    out_spec = pl.BlockSpec((block_rows, LANES), lambda i: (i, 0))

    is_const_w = isinstance(weight, (int, float, np.integer, np.floating))
    if is_const_w:
        w_py = weight if isinstance(weight, (int, float)) else weight.item()
        kernel = functools.partial(_mul_kernel_const, weight=w_py)
        in_specs = [x_spec]
        operands = (x2d,)
    else:
        kernel = _mul_kernel_dyn
        in_specs = [pl.BlockSpec(memory_space=pltpu.MemorySpace.SMEM), x_spec]
        operands = (jnp.asarray(weight, dtype).reshape(1, 1), x2d)

    out2d = pl.pallas_call(
        kernel,
        out_shape=jax.ShapeDtypeStruct((rows, LANES), dtype),
        grid_spec=pltpu.PrefetchScalarGridSpec(
            num_scalar_prefetch=0,
            grid=(nblocks,),
            in_specs=in_specs,
            out_specs=out_spec,
        ),
        compiler_params=pltpu.CompilerParams(
            dimension_semantics=("parallel",),
            vmem_limit_bytes=32 << 20,   # room for 2x (in+out) x 4 MiB buffers on v5e
        ),
    )(*operands)

    out_flat = out2d.reshape(-1)
    if pad:
        out_flat = out_flat[:total]
    return out_flat.reshape(orig_shape)


if __name__ == "__main__":
    key = jax.random.PRNGKey(0)

    B, C, H, W = 2, 4, 16, 16
    x = jax.random.normal(key, (B, C, H, W), dtype=jnp.float32)

    weight = 0.125  # compile-time constant, as in cifar10.py's Mul(0.125)

    # Constant-weight path: weight folded into the kernel body, no SMEM operand.
    out_const = jax.jit(lambda xx: mul_forward(xx, weight))(x)
    out_const = jax.block_until_ready(out_const)

    # Trainable / traced-weight path: weight staged as an SMEM (1,1) scalar.
    out_dyn = jax.jit(mul_forward)(x, jnp.float32(weight))
    out_dyn = jax.block_until_ready(out_dyn)

    # Pure-JAX reference: same semantics as the PyTorch Mul module.
    ref = x * weight

    assert out_const.shape == (B, C, H, W)
    assert out_const.dtype == x.dtype
    assert jnp.array_equal(out_const, ref), "const-weight path mismatch vs reference"
    assert jnp.array_equal(out_dyn, ref), "dynamic-weight path mismatch vs reference"

    print("KERNEL_OK")
</pallas_src>

<mosaic_0001>
module attributes {stable_mosaic.version = 11 : i64} {
  func.func @_mul_kernel_const(%arg0: i32, %arg1: memref<16x128xf32, #tpu.memory_space<vmem>>, %arg2: memref<16x128xf32, #tpu.memory_space<vmem>>) attributes {dimension_semantics = [#tpu.dimension_semantics<parallel>], iteration_bounds = array<i64: 1>, scalar_prefetch = 0 : i64, scratch_operands = 0 : i64, tpu.core_type = #tpu.core_type<tc>, window_params = [{transform_indices = @transform_0, window_bounds = array<i64: 16, 128>}, {transform_indices = @transform_1, window_bounds = array<i64: 16, 128>}]} {
    %c0 = arith.constant 0 : index
    %c0_0 = arith.constant 0 : index
    %0 = vector.load %arg1[%c0, %c0_0] : memref<16x128xf32, #tpu.memory_space<vmem>>, vector<16x128xf32>
    %cst = arith.constant 1.250000e-01 : f32
    %1 = vector.broadcast %cst : f32 to vector<16x128xf32>
    %2 = arith.mulf %0, %1 : vector<16x128xf32>
    %c0_1 = arith.constant 0 : index
    %c0_2 = arith.constant 0 : index
    %3 = vector.load %arg2[%c0_1, %c0_2] : memref<16x128xf32, #tpu.memory_space<vmem>>, vector<16x128xf32>
    tpu.vector_store %arg2[%c0_1, %c0_2], %2 {strides = array<i32>} : memref<16x128xf32, #tpu.memory_space<vmem>>, vector<16x128xf32>,
    return
  }
  func.func @transform_0(%arg0: i32) -> (i32, i32) {
    %c0_i32 = arith.constant 0 : i32
    %c0_i32_0 = arith.constant 0 : i32
    return %arg0, %c0_i32 : i32, i32
  }
  func.func @transform_1(%arg0: i32) -> (i32, i32) {
    %c0_i32 = arith.constant 0 : i32
    %c0_i32_0 = arith.constant 0 : i32
    return %arg0, %c0_i32 : i32, i32
  }
}

</mosaic_0001>

<bundles_post_ra>
// kernel: _lambda_.1
= control target key start
LH: loop header
LB: loop body
LE: loop exit
PB: predicated region body
PF: predicated region fallthrough
CT: control target
= control target key end

     0   :  { %s40_s0 = inlined_call_operand.vmem [shape: f32[16,128], index: 0, kind: input, shape index: {}]   ;;  %s41_s1 = inlined_call_operand.vmem [shape: f32[16,128], index: 1, kind: output, shape index: {}]  }
   0x1   :  { %v8_v0 = vld [vmem:[%s40_s0] sm:$0xff]  ;;  %v9_v1 = vld [vmem:[%s40_s0 + $0x8] sm:$0xff] }
   0x2   :  { %v10_v2 = vmul.f32 0.125, %v8_v0  ;;  %v11_v3 = vmul.f32 0.125, %v9_v1 }
   0x4   :  { %12 = vst [vmem:[%s41_s1] sm:$0xff] %v10_v2  ;;  %13 = vst [vmem:[%s41_s1 + $0x8] sm:$0xff] %v11_v3 }

</bundles_post_ra>
